<compile_context>
chip_gen: v7x
topology: tpu7x:2x2x1
jax: 0.10.0
libtpu: 0.0.40
codegen_flags: <defaults>
</compile_context>

<pallas_src>
import jax
import jax.numpy as jnp
from jax import lax
from jax.experimental import pallas as pl
from jax.experimental.pallas import tpu as pltpu

# ---- small, module-consistent shapes ----------------------------------------
B = 2              # batch
S = 16             # full sequence length (question prefix + sentence)
H = 32             # hidden size (stands in for 768)
N_HEADS = 2
HEAD_DIM = H // N_HEADS
SEN_PRE_LEN = 4    # args.sen_pre_len
L = S - SEN_PRE_LEN            # 12 valid sentence rows
LP = 16                        # sentence rows padded to a sublane multiple (8)
X_ROWS = 24                    # per-example input slab: rows 0:16 sentence, row 16 CLS, rest pad
CLS_ROW = LP
LN_EPS = 1e-5
NEG = -1e30

HP = 128                       # one 128-lane group per fused-matmul segment
OUT_W = 128                    # lane-dense packed output width
COL_SLOG = 4                   # packed cols 4:7  -> s_logits  (broadcast to all rows)
COL_ISON = 8                   # packed cols 8:10 -> is_on_logits

# constants-slab row offsets (all blocks start 8-aligned)
R_GAMMA, R_BETA, R_BIAS = 0, 1, 2
R_WO0 = 8                      # (HP, H) wout block for head 0 (real rows 0:HEAD_DIM)
R_WO1 = R_WO0 + HP             # 136
R_WHD = R_WO1 + HP             # 264   (H, 9) fused head weights (wsf | wion_cls | wion_a | wion_o)
CST_ROWS = R_WHD + H           # 296


# ---- Pallas kernel (one example per grid step) -------------------------------
def com_kernel(x_ref,      # (X_ROWS, H)   rows 0:LP padded sentence, row CLS_ROW = CLS token
               w1_ref,     # (H, 4*HP)     [wa | wo | wq_h0 | wq_h1], one 128-lane group each
               w2_ref,     # (HP, 6*HP)    [wk_h0 | wk_h1 | waf@cols0:2 | wv_h0 | wv_h1 | wof@cols2:4]
               cst_ref,    # (CST_ROWS, H) [gamma; beta; bias; pad; Wo0; Wo1; Whead]
               out_ref):   # (LP, OUT_W)   packed output
    scale = 1.0 / jnp.sqrt(jnp.float32(HEAD_DIM))
    neg = jnp.float32(NEG)

    sent = x_ref[0:LP, :]                                # (16, 32); rows >= L are zero padding
    cls = x_ref[CLS_ROW:CLS_ROW + 1, :]                  # (1, 32)

    valid_row = lax.broadcasted_iota(jnp.int32, (LP, 1), 0) < L       # (16, 1)
    valid_key = lax.broadcasted_iota(jnp.int32, (LP, LP), 1) < L      # (16, 16)

    # stage 1: one MXU push -> [a_rep | o_rep | q_h0 | q_h1], 128-aligned groups
    big1 = jnp.dot(sent, w1_ref[...], preferred_element_type=jnp.float32)   # (16, 512)
    a_rep = big1[:, 0 * HP:1 * HP]                        # real lanes 0:H, rest exact zeros
    o_rep = big1[:, 1 * HP:2 * HP]
    q_h = (big1[:, 2 * HP:3 * HP], big1[:, 3 * HP:4 * HP])

    # stage 2: row-stacked second-level matmul on [a_rep ; o_rep] (one MXU push)
    x2 = jnp.concatenate([a_rep, o_rep], axis=0)                            # (32, 128)
    big2 = jnp.dot(x2, w2_ref[...], preferred_element_type=jnp.float32)     # (32, 768)
    k_h = (big2[0:LP, 0 * HP:1 * HP], big2[0:LP, 1 * HP:2 * HP])
    v_h = (big2[LP:2 * LP, 3 * HP:4 * HP], big2[LP:2 * LP, 4 * HP:5 * HP])
    # span logits already lane-placed: a_logits at cols 0:2, o_logits at cols 2:4
    logits_slab = big2[0:LP, 2 * HP:3 * HP] + big2[LP:2 * LP, 5 * HP:6 * HP]  # (16, 128)

    # constants
    gamma = cst_ref[R_GAMMA:R_GAMMA + 1, :]
    beta = cst_ref[R_BETA:R_BETA + 1, :]
    bias = cst_ref[R_BIAS:R_BIAS + 1, :]                  # cols 0:3 bsf, 3:5 bion
    wo_h = (cst_ref[R_WO0:R_WO0 + HP, :], cst_ref[R_WO1:R_WO1 + HP, :])     # (128, 32) each
    whd = cst_ref[R_WHD:R_WHD + H, :]                     # (32, 32): cols 0:3|3:5|5:7|7:9

    # 2-head attention (q = sentence, k = a_rep, v = o_rep).  Head data lives in
    # lanes 0:HEAD_DIM of its own 128-lane group, so no sub-vreg lane slicing;
    # context never round-trips through a VMEM scratch.
    s_y = jnp.zeros((LP, H), dtype=jnp.float32)
    for h in range(N_HEADS):   # 2 heads; at H=768 use lax.fori_loop + VMEM staging
        sc = lax.dot_general(q_h[h], k_h[h], (((1,), (1,)), ((), ())),
                             preferred_element_type=jnp.float32) * scale    # (16, 16)
        sc = jnp.where(valid_key, sc, neg)                # mask padded keys
        sc = sc - jnp.max(sc, axis=-1, keepdims=True)
        p = jnp.exp(sc)
        attn = p / jnp.sum(p, axis=-1, keepdims=True)     # exact softmax
        ctx = jnp.dot(attn, v_h[h], preferred_element_type=jnp.float32)     # (16, 128)
        s_y = s_y + jnp.dot(ctx, wo_h[h], preferred_element_type=jnp.float32)  # (16, 32)

    # residual + LayerNorm (dropouts are identity in eval mode)
    x = sent + s_y
    mean = jnp.mean(x, axis=-1, keepdims=True)
    var = jnp.mean((x - mean) ** 2, axis=-1, keepdims=True)
    s_x = (x - mean) * lax.rsqrt(var + LN_EPS) * gamma + beta               # (16, 32)

    # masked max-pooling over the valid sentence rows
    s_pool = jnp.max(jnp.where(valid_row, s_x, neg), axis=0, keepdims=True)            # (1, 32)
    a_pool = jnp.max(jnp.where(valid_row, a_rep, neg), axis=0, keepdims=True)[:, 0:H]  # (1, 32)
    o_pool = jnp.max(jnp.where(valid_row, o_rep, neg), axis=0, keepdims=True)[:, 0:H]  # (1, 32)

    # one fused head matmul: [s_pool; cls; a_pool; o_pool] @ [wsf|wion_cls|wion_a|wion_o]
    pooled = jnp.concatenate([s_pool, cls, a_pool, o_pool], axis=0)         # (4, 32)
    yh = jnp.dot(pooled, whd, preferred_element_type=jnp.float32)           # (4, 32)
    s_logits = yh[0:1, 0:3] + bias[:, 0:3]                                  # (1, 3)
    ison = yh[1:2, 3:5] + yh[2:3, 5:7] + yh[3:4, 7:9] + bias[:, 3:5]        # (1, 2)

    head_row = jnp.concatenate(
        [jnp.zeros((1, COL_SLOG), jnp.float32), s_logits,
         jnp.zeros((1, COL_ISON - COL_SLOG - 3), jnp.float32), ison,
         jnp.zeros((1, OUT_W - COL_ISON - 2), jnp.float32)], axis=1)        # (1, 128)

    # single unmasked lane-dense store of the fully assembled slab
    out_ref[...] = logits_slab + head_row


# ---- one-time weight relayout (O(H^2) copies; run once at param-load time) ---
def prepare_weights(p):
    f32 = jnp.float32
    w1 = jnp.zeros((H, 4 * HP), f32)
    w1 = w1.at[:, 0:H].set(p["wa"])
    w1 = w1.at[:, HP:HP + H].set(p["wo"])
    w1 = w1.at[:, 2 * HP:2 * HP + HEAD_DIM].set(p["wq"][:, 0:HEAD_DIM])
    w1 = w1.at[:, 3 * HP:3 * HP + HEAD_DIM].set(p["wq"][:, HEAD_DIM:])

    w2 = jnp.zeros((HP, 6 * HP), f32)
    w2 = w2.at[0:H, 0:HEAD_DIM].set(p["wk"][:, 0:HEAD_DIM])
    w2 = w2.at[0:H, HP:HP + HEAD_DIM].set(p["wk"][:, HEAD_DIM:])
    w2 = w2.at[0:H, 2 * HP:2 * HP + 2].set(p["waf"])                  # a_logits -> cols 0:2
    w2 = w2.at[0:H, 3 * HP:3 * HP + HEAD_DIM].set(p["wv"][:, 0:HEAD_DIM])
    w2 = w2.at[0:H, 4 * HP:4 * HP + HEAD_DIM].set(p["wv"][:, HEAD_DIM:])
    w2 = w2.at[0:H, 5 * HP + 2:5 * HP + 4].set(p["wof"])              # o_logits -> cols 2:4

    cst = jnp.zeros((CST_ROWS, H), f32)
    cst = cst.at[R_GAMMA, :].set(p["ln_g"][0])
    cst = cst.at[R_BETA, :].set(p["ln_b"][0])
    cst = cst.at[R_BIAS, 0:3].set(p["bsf"][0])
    cst = cst.at[R_BIAS, 3:5].set(p["bion"][0])
    cst = cst.at[R_WO0:R_WO0 + HEAD_DIM, :].set(p["wout"][0:HEAD_DIM, :])
    cst = cst.at[R_WO1:R_WO1 + HEAD_DIM, :].set(p["wout"][HEAD_DIM:, :])
    cst = cst.at[R_WHD:R_WHD + H, 0:3].set(p["wsf"])
    cst = cst.at[R_WHD:R_WHD + H, 3:5].set(p["wion"][0:H])
    cst = cst.at[R_WHD:R_WHD + H, 5:7].set(p["wion"][H:2 * H])
    cst = cst.at[R_WHD:R_WHD + H, 7:9].set(p["wion"][2 * H:])
    return {"w1": w1, "w2": w2, "cst": cst}


# ---- wrapper ------------------------------------------------------------------
@jax.jit
def com_forward(bert_feature, prep):
    dt = bert_feature.dtype
    sent = bert_feature[:, SEN_PRE_LEN:, :]                               # (B, L, H)
    # layout plumbing: per-example slab [sentence rows 0:16 (zero padded) | CLS at row 16 | pad]
    x_in = jnp.concatenate(
        [sent,
         jnp.zeros((B, LP - L, H), dt),
         bert_feature[:, 0:1, :],
         jnp.zeros((B, X_ROWS - LP - 1, H), dt)], axis=1).reshape(B * X_ROWS, H)

    packed = pl.pallas_call(
        com_kernel,
        out_shape=jax.ShapeDtypeStruct((B * LP, OUT_W), jnp.float32),
        grid_spec=pltpu.PrefetchScalarGridSpec(
            num_scalar_prefetch=0,
            grid=(B,),                                     # one example per program
            in_specs=[pl.BlockSpec((X_ROWS, H), lambda b: (b, 0)),
                      pl.BlockSpec((H, 4 * HP), lambda b: (0, 0)),
                      pl.BlockSpec((HP, 6 * HP), lambda b: (0, 0)),
                      pl.BlockSpec((CST_ROWS, H), lambda b: (0, 0))],
            out_specs=pl.BlockSpec((LP, OUT_W), lambda b: (b, 0))),
        compiler_params=pltpu.CompilerParams(
            dimension_semantics=("parallel",)),            # v7x: shard examples over both TCs
    )(x_in, prep["w1"], prep["w2"], prep["cst"])

    packed = packed.reshape(B, LP, OUT_W)
    return {"as_p": packed[:, :L, 0],
            "ae_p": packed[:, :L, 1],
            "os_p": packed[:, :L, 2],
            "oe_p": packed[:, :L, 3],
            "s_logits": packed[:, 0, COL_SLOG:COL_SLOG + 3],
            "is_on_logits": packed[:, 0, COL_ISON:COL_ISON + 2]}


# ---- pure-JAX reference (unfused; matches the PyTorch module math) ------------
def com_reference(bert_feature, p):
    sent = bert_feature[:, SEN_PRE_LEN:, :]
    a_rep = sent @ p["wa"]
    a_logits = a_rep @ p["waf"]
    o_rep = sent @ p["wo"]
    o_logits = o_rep @ p["wof"]
    q = sent @ p["wq"]; k = a_rep @ p["wk"]; v = o_rep @ p["wv"]
    scale = 1.0 / jnp.sqrt(jnp.float32(HEAD_DIM))
    ctx = []
    for h in range(N_HEADS):
        sl = slice(h * HEAD_DIM, (h + 1) * HEAD_DIM)
        sc = jnp.einsum("bqd,bkd->bqk", q[:, :, sl], k[:, :, sl]) * scale
        attn = jax.nn.softmax(sc, axis=-1)
        ctx.append(jnp.einsum("bqk,bkd->bqd", attn, v[:, :, sl]))
    s_y = jnp.concatenate(ctx, axis=-1) @ p["wout"]
    x = sent + s_y
    mean = x.mean(-1, keepdims=True)
    var = ((x - mean) ** 2).mean(-1, keepdims=True)
    s_x = (x - mean) * lax.rsqrt(var + LN_EPS) * p["ln_g"][0] + p["ln_b"][0]
    s_logits = jnp.max(s_x, axis=1) @ p["wsf"] + p["bsf"][0]
    cat = jnp.concatenate([bert_feature[:, 0, :],
                           jnp.max(a_rep, axis=1),
                           jnp.max(o_rep, axis=1)], axis=-1)
    ison = cat @ p["wion"] + p["bion"][0]
    return {"as_p": a_logits[..., 0], "ae_p": a_logits[..., 1],
            "os_p": o_logits[..., 0], "oe_p": o_logits[..., 1],
            "s_logits": s_logits, "is_on_logits": ison}


# ---- deterministic parameter init ---------------------------------------------
def init_params(key):
    ks = jax.random.split(key, 16)
    nrm = lambda k, shp: (0.05 * jax.random.normal(k, shp)).astype(jnp.float32)
    return {
        # nn.Linear weights stored as (in, out) so kernel does x @ W
        "wa":   nrm(ks[0], (H, H)),
        "waf":  nrm(ks[1], (H, 2)),
        "wo":   nrm(ks[2], (H, H)),
        "wof":  nrm(ks[3], (H, 2)),
        "wq":   nrm(ks[4], (H, H)),
        "wk":   nrm(ks[5], (H, H)),
        "wv":   nrm(ks[6], (H, H)),
        "wout": nrm(ks[7], (H, H)),
        "ln_g": (1.0 + 0.1 * jax.random.normal(ks[8], (1, H))).astype(jnp.float32),
        "ln_b": nrm(ks[9], (1, H)),
        "wsf":  nrm(ks[10], (H, 3)),
        "bsf":  nrm(ks[11], (1, 3)),
        "wion": nrm(ks[12], (3 * H, 2)),
        "bion": nrm(ks[13], (1, 2)),
    }


if __name__ == "__main__":
    key = jax.random.PRNGKey(0)
    k_in, k_par = jax.random.split(key)
    bert_feature = jax.random.normal(k_in, (B, S, H), dtype=jnp.float32)
    params = init_params(k_par)

    prep = prepare_weights(params)            # one-time relayout (not per-call)
    out = com_forward(bert_feature, prep)
    out = jax.tree_util.tree_map(jax.block_until_ready, out)

    ref = com_reference(bert_feature, params)
    for name in ("as_p", "ae_p", "os_p", "oe_p", "s_logits", "is_on_logits"):
        assert out[name].shape == ref[name].shape, name
        assert jnp.allclose(out[name], ref[name], atol=1e-3, rtol=1e-3), name

    print("KERNEL_OK")
</pallas_src>

<mosaic_0001>
module attributes {stable_mosaic.version = 11 : i64} {
  func.func @com_kernel(%arg0: i32, %arg1: memref<24x32xf32, #tpu.memory_space<vmem>>, %arg2: memref<32x512xf32, #tpu.memory_space<vmem>>, %arg3: memref<128x768xf32, #tpu.memory_space<vmem>>, %arg4: memref<296x32xf32, #tpu.memory_space<vmem>>, %arg5: memref<16x128xf32, #tpu.memory_space<vmem>>) attributes {dimension_semantics = [#tpu.dimension_semantics<parallel>], iteration_bounds = array<i64: 2>, scalar_prefetch = 0 : i64, scratch_operands = 0 : i64, tpu.core_type = #tpu.core_type<tc>, window_params = [{transform_indices = @transform_0, window_bounds = array<i64: 24, 32>}, {pipeline_mode = #tpu.pipeline_mode<synchronous>, transform_indices = @transform_1, window_bounds = array<i64: 32, 512>}, {pipeline_mode = #tpu.pipeline_mode<synchronous>, transform_indices = @transform_2, window_bounds = array<i64: 128, 768>}, {pipeline_mode = #tpu.pipeline_mode<synchronous>, transform_indices = @transform_3, window_bounds = array<i64: 296, 32>}, {transform_indices = @transform_4, window_bounds = array<i64: 16, 128>}]} {
    %cst = arith.constant 1.600000e+01 : f32
    %0 = math.sqrt %cst : f32
    %cst_0 = arith.constant 1.000000e+00 : f32
    %1 = arith.divf %cst_0, %0 : f32
    %c0 = arith.constant 0 : index
    %c0_1 = arith.constant 0 : index
    %2 = vector.load %arg1[%c0, %c0_1] : memref<24x32xf32, #tpu.memory_space<vmem>>, vector<16x32xf32>
    %c16 = arith.constant 16 : index
    %c0_2 = arith.constant 0 : index
    %3 = vector.load %arg1[%c16, %c0_2] : memref<24x32xf32, #tpu.memory_space<vmem>>, vector<1x32xf32>
    %4 = tpu.iota {dimensions = array<i32: 0>} : vector<16x1xi32>
    %c12_i32 = arith.constant 12 : i32
    %5 = vector.broadcast %c12_i32 : i32 to vector<16x1xi32>
    %6 = arith.cmpi slt, %4, %5 : vector<16x1xi32>
    %7 = tpu.iota {dimensions = array<i32: 1>} : vector<16x16xi32>
    %c12_i32_3 = arith.constant 12 : i32
    %8 = vector.broadcast %c12_i32_3 : i32 to vector<16x16xi32>
    %9 = arith.cmpi slt, %7, %8 : vector<16x16xi32>
    %c0_4 = arith.constant 0 : index
    %c0_5 = arith.constant 0 : index
    %10 = vector.load %arg2[%c0_4, %c0_5] : memref<32x512xf32, #tpu.memory_space<vmem>>, vector<32x512xf32>
    %cst_6 = arith.constant dense<0.000000e+00> : vector<16x512xf32>
    %11 = tpu.matmul %2, %10, %cst_6 {dimension_numbers = #tpu.dot_dimension_numbers<[1], [0], [0], [1], [0, 0, 1, 1], [], []>} : vector<16x32xf32>, vector<32x512xf32>, vector<16x512xf32> -> vector<16x512xf32>
    %12 = vector.extract_strided_slice %11 {offsets = [0, 0], sizes = [16, 128], strides = [1, 1]} : vector<16x512xf32> to vector<16x128xf32>
    %13 = vector.extract_strided_slice %11 {offsets = [0, 128], sizes = [16, 128], strides = [1, 1]} : vector<16x512xf32> to vector<16x128xf32>
    %14 = vector.extract_strided_slice %11 {offsets = [0, 256], sizes = [16, 128], strides = [1, 1]} : vector<16x512xf32> to vector<16x128xf32>
    %15 = vector.extract_strided_slice %11 {offsets = [0, 384], sizes = [16, 128], strides = [1, 1]} : vector<16x512xf32> to vector<16x128xf32>
    %16 = tpu.concatenate %12, %13 in 0 : vector<16x128xf32>, vector<16x128xf32> -> vector<32x128xf32>
    %c0_7 = arith.constant 0 : index
    %c0_8 = arith.constant 0 : index
    %17 = vector.load %arg3[%c0_7, %c0_8] : memref<128x768xf32, #tpu.memory_space<vmem>>, vector<128x768xf32>
    %cst_9 = arith.constant dense<0.000000e+00> : vector<32x768xf32>
    %18 = tpu.matmul %16, %17, %cst_9 {dimension_numbers = #tpu.dot_dimension_numbers<[1], [0], [0], [1], [0, 0, 1, 1], [], []>} : vector<32x128xf32>, vector<128x768xf32>, vector<32x768xf32> -> vector<32x768xf32>
    %19 = vector.extract_strided_slice %18 {offsets = [0, 0], sizes = [16, 128], strides = [1, 1]} : vector<32x768xf32> to vector<16x128xf32>
    %20 = vector.extract_strided_slice %18 {offsets = [0, 128], sizes = [16, 128], strides = [1, 1]} : vector<32x768xf32> to vector<16x128xf32>
    %21 = vector.extract_strided_slice %18 {offsets = [16, 384], sizes = [16, 128], strides = [1, 1]} : vector<32x768xf32> to vector<16x128xf32>
    %22 = vector.extract_strided_slice %18 {offsets = [16, 512], sizes = [16, 128], strides = [1, 1]} : vector<32x768xf32> to vector<16x128xf32>
    %23 = vector.extract_strided_slice %18 {offsets = [0, 256], sizes = [16, 128], strides = [1, 1]} : vector<32x768xf32> to vector<16x128xf32>
    %24 = vector.extract_strided_slice %18 {offsets = [16, 640], sizes = [16, 128], strides = [1, 1]} : vector<32x768xf32> to vector<16x128xf32>
    %25 = arith.addf %23, %24 : vector<16x128xf32>
    %c0_10 = arith.constant 0 : index
    %c0_11 = arith.constant 0 : index
    %26 = vector.load %arg4[%c0_10, %c0_11] : memref<296x32xf32, #tpu.memory_space<vmem>>, vector<1x32xf32>
    %c1 = arith.constant 1 : index
    %c0_12 = arith.constant 0 : index
    %27 = vector.load %arg4[%c1, %c0_12] : memref<296x32xf32, #tpu.memory_space<vmem>>, vector<1x32xf32>
    %c2 = arith.constant 2 : index
    %c0_13 = arith.constant 0 : index
    %28 = vector.load %arg4[%c2, %c0_13] : memref<296x32xf32, #tpu.memory_space<vmem>>, vector<1x32xf32>
    %c8 = arith.constant 8 : index
    %c0_14 = arith.constant 0 : index
    %29 = vector.load %arg4[%c8, %c0_14] : memref<296x32xf32, #tpu.memory_space<vmem>>, vector<128x32xf32>
    %c136 = arith.constant 136 : index
    %c0_15 = arith.constant 0 : index
    %30 = vector.load %arg4[%c136, %c0_15] : memref<296x32xf32, #tpu.memory_space<vmem>>, vector<128x32xf32>
    %c264 = arith.constant 264 : index
    %c0_16 = arith.constant 0 : index
    %31 = vector.load %arg4[%c264, %c0_16] : memref<296x32xf32, #tpu.memory_space<vmem>>, vector<32x32xf32>
    %cst_17 = arith.constant 0.000000e+00 : f32
    %32 = vector.broadcast %cst_17 : f32 to vector<16x32xf32>
    %cst_18 = arith.constant dense<0.000000e+00> : vector<16x16xf32>
    %33 = tpu.matmul %14, %19, %cst_18 {dimension_numbers = #tpu.dot_dimension_numbers<[1], [1], [0], [0], [0, 0, 1, 0], [], []>} : vector<16x128xf32>, vector<16x128xf32>, vector<16x16xf32> -> vector<16x16xf32>
    %34 = vector.broadcast %1 : f32 to vector<16x16xf32>
    %35 = arith.mulf %33, %34 : vector<16x16xf32>
    %cst_19 = arith.constant -1.000000e+30 : f32
    %36 = vector.broadcast %cst_19 : f32 to vector<16x16xf32>
    %37 = arith.select %9, %35, %36 : vector<16x16xi1>, vector<16x16xf32>
    %cst_20 = arith.constant dense<0xFF800000> : vector<16xf32>
    %38 = vector.multi_reduction <maximumf>, %37, %cst_20 [1] : vector<16x16xf32> to vector<16xf32>
    %39 = vector.shape_cast %38 : vector<16xf32> to vector<16x1xf32>
    %40 = vector.broadcast %39 : vector<16x1xf32> to vector<16x16xf32>
    %41 = arith.subf %37, %40 : vector<16x16xf32>
    %42 = math.exp %41 : vector<16x16xf32>
    %cst_21 = arith.constant dense<0.000000e+00> : vector<16xf32>
    %43 = vector.multi_reduction <add>, %42, %cst_21 [1] : vector<16x16xf32> to vector<16xf32>
    %44 = vector.shape_cast %43 : vector<16xf32> to vector<16x1xf32>
    %45 = vector.broadcast %44 : vector<16x1xf32> to vector<16x16xf32>
    %46 = arith.divf %42, %45 : vector<16x16xf32>
    %cst_22 = arith.constant dense<0.000000e+00> : vector<16x128xf32>
    %47 = tpu.matmul %46, %21, %cst_22 {dimension_numbers = #tpu.dot_dimension_numbers<[1], [0], [0], [1], [0, 0, 1, 1], [], []>} : vector<16x16xf32>, vector<16x128xf32>, vector<16x128xf32> -> vector<16x128xf32>
    %cst_23 = arith.constant dense<0.000000e+00> : vector<16x32xf32>
    %48 = tpu.matmul %47, %29, %cst_23 {dimension_numbers = #tpu.dot_dimension_numbers<[1], [0], [0], [1], [0, 0, 1, 1], [], []>} : vector<16x128xf32>, vector<128x32xf32>, vector<16x32xf32> -> vector<16x32xf32>
    %49 = arith.addf %32, %48 : vector<16x32xf32>
    %cst_24 = arith.constant dense<0.000000e+00> : vector<16x16xf32>
    %50 = tpu.matmul %15, %20, %cst_24 {dimension_numbers = #tpu.dot_dimension_numbers<[1], [1], [0], [0], [0, 0, 1, 0], [], []>} : vector<16x128xf32>, vector<16x128xf32>, vector<16x16xf32> -> vector<16x16xf32>
    %51 = vector.broadcast %1 : f32 to vector<16x16xf32>
    %52 = arith.mulf %50, %51 : vector<16x16xf32>
    %cst_25 = arith.constant -1.000000e+30 : f32
    %53 = vector.broadcast %cst_25 : f32 to vector<16x16xf32>
    %54 = arith.select %9, %52, %53 : vector<16x16xi1>, vector<16x16xf32>
    %cst_26 = arith.constant dense<0xFF800000> : vector<16xf32>
    %55 = vector.multi_reduction <maximumf>, %54, %cst_26 [1] : vector<16x16xf32> to vector<16xf32>
    %56 = vector.shape_cast %55 : vector<16xf32> to vector<16x1xf32>
    %57 = vector.broadcast %56 : vector<16x1xf32> to vector<16x16xf32>
    %58 = arith.subf %54, %57 : vector<16x16xf32>
    %59 = math.exp %58 : vector<16x16xf32>
    %cst_27 = arith.constant dense<0.000000e+00> : vector<16xf32>
    %60 = vector.multi_reduction <add>, %59, %cst_27 [1] : vector<16x16xf32> to vector<16xf32>
    %61 = vector.shape_cast %60 : vector<16xf32> to vector<16x1xf32>
    %62 = vector.broadcast %61 : vector<16x1xf32> to vector<16x16xf32>
    %63 = arith.divf %59, %62 : vector<16x16xf32>
    %cst_28 = arith.constant dense<0.000000e+00> : vector<16x128xf32>
    %64 = tpu.matmul %63, %22, %cst_28 {dimension_numbers = #tpu.dot_dimension_numbers<[1], [0], [0], [1], [0, 0, 1, 1], [], []>} : vector<16x16xf32>, vector<16x128xf32>, vector<16x128xf32> -> vector<16x128xf32>
    %cst_29 = arith.constant dense<0.000000e+00> : vector<16x32xf32>
    %65 = tpu.matmul %64, %30, %cst_29 {dimension_numbers = #tpu.dot_dimension_numbers<[1], [0], [0], [1], [0, 0, 1, 1], [], []>} : vector<16x128xf32>, vector<128x32xf32>, vector<16x32xf32> -> vector<16x32xf32>
    %66 = arith.addf %49, %65 : vector<16x32xf32>
    %67 = arith.addf %2, %66 : vector<16x32xf32>
    %cst_30 = arith.constant dense<0.000000e+00> : vector<16xf32>
    %68 = vector.multi_reduction <add>, %67, %cst_30 [1] : vector<16x32xf32> to vector<16xf32>
    %69 = vector.shape_cast %68 : vector<16xf32> to vector<16x1xf32>
    %cst_31 = arith.constant 3.200000e+01 : f32
    %70 = vector.broadcast %cst_31 : f32 to vector<16x1xf32>
    %71 = arith.divf %69, %70 : vector<16x1xf32>
    %72 = vector.broadcast %71 : vector<16x1xf32> to vector<16x32xf32>
    %73 = arith.subf %67, %72 : vector<16x32xf32>
    %74 = arith.mulf %73, %73 : vector<16x32xf32>
    %cst_32 = arith.constant dense<0.000000e+00> : vector<16xf32>
    %75 = vector.multi_reduction <add>, %74, %cst_32 [1] : vector<16x32xf32> to vector<16xf32>
    %76 = vector.shape_cast %75 : vector<16xf32> to vector<16x1xf32>
    %cst_33 = arith.constant 3.200000e+01 : f32
    %77 = vector.broadcast %cst_33 : f32 to vector<16x1xf32>
    %78 = arith.divf %76, %77 : vector<16x1xf32>
    %79 = vector.broadcast %71 : vector<16x1xf32> to vector<16x32xf32>
    %80 = arith.subf %67, %79 : vector<16x32xf32>
    %cst_34 = arith.constant 9.99999974E-6 : f32
    %81 = vector.broadcast %cst_34 : f32 to vector<16x1xf32>
    %82 = arith.addf %78, %81 : vector<16x1xf32>
    %83 = math.rsqrt %82 : vector<16x1xf32>
    %84 = vector.broadcast %83 : vector<16x1xf32> to vector<16x32xf32>
    %85 = arith.mulf %80, %84 : vector<16x32xf32>
    %86 = vector.broadcast %26 : vector<1x32xf32> to vector<16x32xf32>
    %87 = arith.mulf %85, %86 : vector<16x32xf32>
    %88 = vector.broadcast %27 : vector<1x32xf32> to vector<16x32xf32>
    %89 = arith.addf %87, %88 : vector<16x32xf32>
    %cst_35 = arith.constant -1.000000e+30 : f32
    %90 = vector.shape_cast %6 : vector<16x1xi1> to vector<16x1xi1>
    %91 = vector.broadcast %90 : vector<16x1xi1> to vector<16x32xi1>
    %92 = vector.broadcast %cst_35 : f32 to vector<16x32xf32>
    %93 = arith.select %91, %89, %92 : vector<16x32xi1>, vector<16x32xf32>
    %cst_36 = arith.constant dense<0xFF800000> : vector<32xf32>
    %94 = vector.multi_reduction <maximumf>, %93, %cst_36 [0] : vector<16x32xf32> to vector<32xf32>
    %95 = vector.shape_cast %94 : vector<32xf32> to vector<1x32xf32>
    %cst_37 = arith.constant -1.000000e+30 : f32
    %96 = vector.shape_cast %6 : vector<16x1xi1> to vector<16x1xi1>
    %97 = vector.broadcast %96 : vector<16x1xi1> to vector<16x128xi1>
    %98 = vector.broadcast %cst_37 : f32 to vector<16x128xf32>
    %99 = arith.select %97, %12, %98 : vector<16x128xi1>, vector<16x128xf32>
    %cst_38 = arith.constant dense<0xFF800000> : vector<128xf32>
    %100 = vector.multi_reduction <maximumf>, %99, %cst_38 [0] : vector<16x128xf32> to vector<128xf32>
    %101 = vector.shape_cast %100 : vector<128xf32> to vector<1x128xf32>
    %102 = vector.extract_strided_slice %101 {offsets = [0, 0], sizes = [1, 32], strides = [1, 1]} : vector<1x128xf32> to vector<1x32xf32>
    %cst_39 = arith.constant -1.000000e+30 : f32
    %103 = vector.shape_cast %6 : vector<16x1xi1> to vector<16x1xi1>
    %104 = vector.broadcast %103 : vector<16x1xi1> to vector<16x128xi1>
    %105 = vector.broadcast %cst_39 : f32 to vector<16x128xf32>
    %106 = arith.select %104, %13, %105 : vector<16x128xi1>, vector<16x128xf32>
    %cst_40 = arith.constant dense<0xFF800000> : vector<128xf32>
    %107 = vector.multi_reduction <maximumf>, %106, %cst_40 [0] : vector<16x128xf32> to vector<128xf32>
    %108 = vector.shape_cast %107 : vector<128xf32> to vector<1x128xf32>
    %109 = vector.extract_strided_slice %108 {offsets = [0, 0], sizes = [1, 32], strides = [1, 1]} : vector<1x128xf32> to vector<1x32xf32>
    %110 = tpu.concatenate %95, %3, %102, %109 in 0 : vector<1x32xf32>, vector<1x32xf32>, vector<1x32xf32>, vector<1x32xf32> -> vector<4x32xf32>
    %cst_41 = arith.constant dense<0.000000e+00> : vector<4x32xf32>
    %111 = tpu.matmul %110, %31, %cst_41 {dimension_numbers = #tpu.dot_dimension_numbers<[1], [0], [0], [1], [0, 0, 1, 1], [], []>} : vector<4x32xf32>, vector<32x32xf32>, vector<4x32xf32> -> vector<4x32xf32>
    %112 = vector.extract_strided_slice %111 {offsets = [0, 0], sizes = [1, 3], strides = [1, 1]} : vector<4x32xf32> to vector<1x3xf32>
    %113 = vector.extract_strided_slice %28 {offsets = [0, 0], sizes = [1, 3], strides = [1, 1]} : vector<1x32xf32> to vector<1x3xf32>
    %114 = arith.addf %112, %113 : vector<1x3xf32>
    %115 = vector.extract_strided_slice %111 {offsets = [1, 3], sizes = [1, 2], strides = [1, 1]} : vector<4x32xf32> to vector<1x2xf32>
    %116 = vector.extract_strided_slice %111 {offsets = [2, 5], sizes = [1, 2], strides = [1, 1]} : vector<4x32xf32> to vector<1x2xf32>
    %117 = arith.addf %115, %116 : vector<1x2xf32>
    %118 = vector.extract_strided_slice %111 {offsets = [3, 7], sizes = [1, 2], strides = [1, 1]} : vector<4x32xf32> to vector<1x2xf32>
    %119 = arith.addf %117, %118 : vector<1x2xf32>
    %120 = vector.extract_strided_slice %28 {offsets = [0, 3], sizes = [1, 2], strides = [1, 1]} : vector<1x32xf32> to vector<1x2xf32>
    %121 = arith.addf %119, %120 : vector<1x2xf32>
    %cst_42 = arith.constant 0.000000e+00 : f32
    %122 = vector.broadcast %cst_42 : f32 to vector<1x4xf32>
    %cst_43 = arith.constant 0.000000e+00 : f32
    %123 = vector.broadcast %cst_43 : f32 to vector<1x1xf32>
    %cst_44 = arith.constant 0.000000e+00 : f32
    %124 = vector.broadcast %cst_44 : f32 to vector<1x118xf32>
    %125 = tpu.concatenate %122, %114, %123, %121, %124 in 1 : vector<1x4xf32>, vector<1x3xf32>, vector<1x1xf32>, vector<1x2xf32>, vector<1x118xf32> -> vector<1x128xf32>
    %126 = vector.broadcast %125 : vector<1x128xf32> to vector<16x128xf32>
    %127 = arith.addf %25, %126 : vector<16x128xf32>
    %c0_45 = arith.constant 0 : index
    %c0_46 = arith.constant 0 : index
    %128 = vector.load %arg5[%c0_45, %c0_46] : memref<16x128xf32, #tpu.memory_space<vmem>>, vector<16x128xf32>
    tpu.vector_store %arg5[%c0_45, %c0_46], %127 {strides = array<i32>} : memref<16x128xf32, #tpu.memory_space<vmem>>, vector<16x128xf32>,
    return
  }
  func.func @transform_0(%arg0: i32) -> (i32, i32) {
    %c0_i32 = arith.constant 0 : i32
    %c0_i32_0 = arith.constant 0 : i32
    return %arg0, %c0_i32 : i32, i32
  }
  func.func @transform_1(%arg0: i32) -> (i32, i32) {
    %c0_i32 = arith.constant 0 : i32
    %c0_i32_0 = arith.constant 0 : i32
    %c0_i32_1 = arith.constant 0 : i32
    return %c0_i32, %c0_i32_0 : i32, i32
  }
  func.func @transform_2(%arg0: i32) -> (i32, i32) {
    %c0_i32 = arith.constant 0 : i32
    %c0_i32_0 = arith.constant 0 : i32
    %c0_i32_1 = arith.constant 0 : i32
    return %c0_i32, %c0_i32_0 : i32, i32
  }
  func.func @transform_3(%arg0: i32) -> (i32, i32) {
    %c0_i32 = arith.constant 0 : i32
    %c0_i32_0 = arith.constant 0 : i32
    %c0_i32_1 = arith.constant 0 : i32
    return %c0_i32, %c0_i32_0 : i32, i32
  }
  func.func @transform_4(%arg0: i32) -> (i32, i32) {
    %c0_i32 = arith.constant 0 : i32
    %c0_i32_0 = arith.constant 0 : i32
    return %arg0, %c0_i32 : i32, i32
  }
}

</mosaic_0001>

<bundles_post_ra>
// kernel: com_forward.1
= control target key start
LH: loop header
LB: loop body
LE: loop exit
PB: predicated region body
PF: predicated region fallthrough
CT: control target
= control target key end

     0   :  { %9 = vsyncpa [#allocation3], 0  ;;  %s2088_s15 = smov 0   ;;  %s2443_s0 = inlined_call_operand.vmem [shape: f32[48,32], index: 0, kind: input, shape index: {}]   ;;  %s2444_s1 = inlined_call_operand.vmem [shape: f32[32,512], index: 1, kind: input, shape index: {}]   ;;  %s2445_s2 = inlined_call_operand.hbm [shape: f32[128,768], index: 2, kind: input, shape index: {}]   ;;  %s2446_s3 = inlined_call_operand.vmem [shape: f32[296,32], index: 3, kind: input, shape index: {}]   ;;  %s2447_s4 = inlined_call_operand.vmem [shape: f32[32,128], index: 4, kind: output, shape index: {}]  }
   0x1 LB: > { %s2094_s16 = sadd.s32 4294967295, %s2051_s15   ;;  %p1578_p0 = scmp.ge.s32.totalorder %s2051_s15, 1  ;;  %s2051_s15 = sphi %s2088_s15, %s15_s15  }
   0x2   : > { %p135_p1 = scmp.lt.s32.totalorder %s2051_s15, 3  ;;  %s2053_s17 = smov [#allocation2]  }
   0x3   : > { %s150_s18 = sshll.u32 %s2053_s17, 4  ;;  %p2448_p3 = scmp.eq.s32.totalorder %s2094_s16, 0  ;;  %s151_s18 = int_to_ptr.vmem [resolvable:$true] %s150_s18 }
   0x4   : > { %p2098_p2 = pnand %p1578_p0, %p135_p1  ;;  %s2013_s23 = scalar_lea.hbm %s2445_s2, 12288 }
   0x5   : > { %p2014_p6 = scmp.ne.s32.totalorder %s2445_s2, %s2013_s23  ;;  %p2020_p10 = scmp.lt.u32.totalorder %s2013_s23, %s2445_s2 }
   0x6   : > { %s2450_s19 = scalar_select %p2098_p2, 1, 0 }
   0x7   : > { %p1969_p4 = pneg %p2098_p2 }
   0x9   : > { %p2107_p5 = pnand %p2448_p3, %p1969_p4 }
   0xb   : > { %p2015_p7 = pneg %p2107_p5 }
   0xd   : > { %p2016_p8 = pnand %p2015_p7, %p2014_p6 }
   0xf   : > { %p2017_p9 = pneg %p2016_p8 }
  0x11   : > { %p2022_p11 = pnand %p2020_p10, %p2017_p9 }
  0x13   : > { %2025 = shalt.err (!%p2022_p11)
}
  0x14   : > { %s2026_s28 = scalar_lea.vmem %s151_s18, 12288  ;;  %p2034_p1 = scmp.lt.s32.totalorder %s151_s18, %s151_s18 }
  0x15   : > { %p2027_p12 = scmp.ne.s32.totalorder %s151_s18, %s2026_s28  ;;  %p2035_p4 = scmp.lt.s32.totalorder %s2026_s28, %s2026_s28 }
  0x17   : > { %p2029_p13 = pnand %p2027_p12, %p2015_p7  ;;  %p2036_p3 = por %p2035_p4, %p2034_p1 }
  0x19   : > { %p2030_p0 = pneg %p2029_p13 }
  0x1b   : > { %p2037_p2 = pnand %p2036_p3, %p2030_p0 }
  0x1d   : > { %2040 = shalt.err (!%p2037_p2)
}
  0x1e   : > { %s2054_s29 = smov 768   ;;  %s2055_s30 = smov 48  }
  0x1f   : > { %1972 = dma.hbm_to_vmem [thread:$0]  (!%p2107_p5), %s2445_s2, 12288, %s151_s18, [#allocation3], %s2054_s29, %s2054_s29, %s2055_s30  }
  0x20   : > { %p2452_p6 = scmp.ne.s32.totalorder %s2450_s19, 0 }
  0x21   : > { %p2453_p8 = scmp.eq.s32.totalorder (!%p2452_p6), %s2094_s16, 0 }
  0x22   : > { %178 = sbr.rel (%p2452_p6) target bundleno = 2816 (0xb00), region = 36 }
  0x29   : > { %2046 = dma.done.wait (%p2453_p8), [#allocation3], 12288   ;;  %p2454_p7 = pmov %p2453_p8 }
  0x2a   : > { %s204_s7 = smul.u32 3, %s2094_s16  ;;  %v2056_v0 = vmov 0.0   ;;  %v228_v1 = vld [vmem:[%s2444_s1 + $0x8] sm:$0xff]  ;;  %v227_v3 = vld [vmem:[%s2444_s1] sm:$0xff]  ;;  %v230_v12 = vld [vmem:[%s2444_s1 + $0x18] sm:$0xff]  ;;  %vm243_vm0 = vcmask 261120  }
  0x2b   : > { %2048 = vsyncadd (%p2454_p7), [#allocation3], 4294955008  ;;  %314 = vmatprep.mubr.f32.mxu0 %v2056_v0  ;;  %391 = vmatprep.mubr.f32.mxu1 %v2056_v0  ;;  %v232_v2 = vld [vmem:[%s2444_s1 + $0x28] sm:$0xff]  ;;  %v231_v5 = vld [vmem:[%s2444_s1 + $0x20] sm:$0xff]  ;;  %vm875_vm3 = vcmask 130048   ;;  %vm2058_vm4 = vmmov 0  }
  0x2c   : > { %p205_p2 = scmp.lt.s32.totalorder %s204_s7, 5  ;;  %v1765_v4 = vpack.c.bf16 %v232_v2, %v228_v1  ;;  %v236_v6 = vld [vmem:[%s2444_s1 + $0x48] sm:$0xff]  ;;  %v1767_v8 = vpack.c.bf16 %v231_v5, %v227_v3  ;;  %v235_v10 = vld [vmem:[%s2444_s1 + $0x40] sm:$0xff]  ;;  %v234_v14 = vld [vmem:[%s2444_s1 + $0x38] sm:$0xff]  ;;  %vm1388_vm5 = vcmask 1040384   ;;  %vm1390_vm6 = vcmask 1041408  }
  0x2d   : > { %v240_v7 = vld [vmem:[%s2444_s1 + $0x68] sm:$0xff]  ;;  %v239_v11 = vld [vmem:[%s2444_s1 + $0x60] sm:$0xff]  ;;  %v229_v15 = vld [vmem:[%s2444_s1 + $0x10] sm:$0xff]  ;;  %v1773_v17 = vpack.c.bf16 %v234_v14, %v230_v12  ;;  %vm1392_vm7 = vcmask 1042432   ;;  %s2059_s30 = smov 124   ;;  %s2060_s6 = smov 126  }
  0x2e   : > { %s2456_s7 = smov (!%p205_p2, %s204_s7), 5  ;;  %v1769_v9 = vpack.c.bf16 %v240_v7, %v236_v6  ;;  %1766 = vmatprep.subr.bf16.mxu0 %v1765_v4  ;;  %v1771_v13 = vpack.c.bf16 %v239_v11, %v235_v10  ;;  %v233_v16 = vld [vmem:[%s2444_s1 + $0x30] sm:$0xff]  ;;  %v238_v19 = vld [vmem:[%s2444_s1 + $0x58] sm:$0xff]  ;;  %v405_v24 = vld [vmem:[#allocation2 + $0x8] sm:$0xff]  ;;  %s2062_s8 = smov 5   ;;  %vm1492_vm8 = vcmask 31744  }
  0x2f   : > { %s1583_s22 = sshll.u32 %s2456_s7, 3  ;;  %1768 = vmatpush1.bf16.msra.mxu0 %v1767_v8  ;;  %v1775_v18 = vpack.c.bf16 %v233_v16, %v229_v15  ;;  %v242_v20 = vld [vmem:[%s2444_s1 + $0x78] sm:$0xff]  ;;  %v237_v21 = vld [vmem:[%s2444_s1 + $0x50] sm:$0xff]  ;;  %1774 = vmatprep.subr.bf16.mxu1 %v1773_v17  ;;  %v409_v27 = vld [vmem:[#allocation2 + $0x28] sm:$0xff]  ;;  %s2061_s7 = smov 4   ;;  %vm1494_vm9 = vcmask 56320  }
  0x30   : > { %s2166_s5 = scalar_lea.vmem %s2443_s0, %s1583_s22  ;;  %1770 = vmatprep.subr.bf16.mxu0 %v1769_v9  ;;  %v1777_v22 = vpack.c.bf16 %v242_v20, %v238_v19  ;;  %v241_v23 = vld [vmem:[%s2444_s1 + $0x70] sm:$0xff]  ;;  %v411_v25 = vld [vmem:[#allocation2 + $0x38] sm:$0xff]  ;;  %v408_v30 = vld [vmem:[#allocation2 + $0x20] sm:$0xff]  ;;  %s1584_s9 = sshll.u32 %s2094_s16, 1  ;;  %vm1496_vm10 = vcmask 64512   ;;  %vm1498_vm11 = vcmask 80896  }
  0x31   : > { %v2190_v26 = vld [vmem:[%s2166_s5] sm:$0xff]  ;;  %1776 = vmatpush1.bf16.msra.mxu1 %v1775_v18  ;;  %v1779_v28 = vpack.c.bf16 %v241_v23, %v237_v21  ;;  %v415_v29 = vld [vmem:[#allocation2 + $0x58] sm:$0xff]  ;;  %v414_v31 = vld [vmem:[#allocation2 + $0x50] sm:$0xff]  ;;  %v1781_v32 = vpack.c.bf16 %v411_v25, %v405_v24  ;;  %p211_p3 = scmp.lt.s32.totalorder %s1584_s9, 3 }
  0x32   : > { %1778 = vmatprep.subr.bf16.mxu1 %v1777_v22  ;;  %v404_v33 = vld [vmem:[#allocation2] sm:$0xff]  ;;  %v410_v34 = vld [vmem:[#allocation2 + $0x30] sm:$0xff]  ;;  %v1845_v35 = vpack.c.bf16 %v415_v29, %v409_v27  ;;  %v1847_v36 = vpack.c.bf16 %v414_v31, %v408_v30  ;;  %v417_v37 = vld [vmem:[#allocation2 + $0x68] sm:$0xff] }
  0x33   : > { %1772 = vmatpush1.bf16.msra.mxu0 %v1771_v13  ;;  %v423_v38 = vld [vmem:[#allocation2 + $0x98] sm:$0xff]  ;;  %v421_v39 = vld [vmem:[#allocation2 + $0x88] sm:$0xff]  ;;  %v420_v42 = vld [vmem:[#allocation2 + $0x80] sm:$0xff]  ;;  %v1783_v45 = vpack.c.bf16 %v410_v34, %v404_v33  ;;  %s2458_s9 = smov (!%p211_p3, %s1584_s9), 3 }
  0x34   : > { %v427_v40 = vld [vmem:[#allocation2 + $0xb8] sm:$0xff]  ;;  %1846 = vmatprep.subr.bf16.mxu0 %v1845_v35  ;;  %v426_v43 = vld [vmem:[#allocation2 + $0xb0] sm:$0xff]  ;;  %v2196_v44 = vld [vmem:[%s2166_s5 + $0x8] sm:$0xff]  ;;  %v1785_v48 = vpack.c.bf16 %v423_v38, %v417_v37  ;;  %s1585_s10 = sshll.u32 %s2458_s9, 3 }
  0x35   : > { %v1849_v41 = vpack.c.bf16 %v427_v40, %v421_v39  ;;  %1780 = vmatpush1.bf16.msra.mxu1 %v1779_v28  ;;  %v416_v46 = vld [vmem:[#allocation2 + $0x60] sm:$0xff]  ;;  %v422_v47 = vld [vmem:[#allocation2 + $0x90] sm:$0xff]  ;;  %v1851_v49 = vpack.c.bf16 %v426_v43, %v420_v42  ;;  %v429_v50 = vld [vmem:[#allocation2 + $0xc8] sm:$0xff]  ;;  %s214_s16 = scalar_lea.vmem %s2447_s4, %s1585_s10 }
  0x36   : > { %1586 = vmatmul.mubr.msk.f32.vlgmr.msra.gmra.mrb[0].mxu0 %vm243_vm0, %v2190_v26  ;;  %1782 = vmatprep.subr.bf16.mxu1 %v1781_v32  ;;  %v433_v51 = vld [vmem:[#allocation2 + $0xe8] sm:$0xff]  ;;  %v439_v52 = vld [vmem:[#allocation2 + $0x118] sm:$0xff]  ;;  %v432_v55 = vld [vmem:[#allocation2 + $0xe0] sm:$0xff]  ;;  %v1787_v58 = vpack.c.bf16 %v422_v47, %v416_v46 }
  0x37   : > { %320 = vmatprep.mubr.f32.mxu0 %v2056_v0  ;;  %1848 = vmatpush1.bf16.msra.mxu0 %v1847_v36  ;;  %v435_v53 = vld [vmem:[#allocation2 + $0xf8] sm:$0xff]  ;;  %v1853_v54 = vpack.c.bf16 %v439_v52, %v433_v51  ;;  %v438_v56 = vld [vmem:[#allocation2 + $0x110] sm:$0xff]  ;;  %v445_v57 = vld [vmem:[#allocation2 + $0x148] sm:$0xff] }
  0x38   : > { %1850 = vmatprep.subr.bf16.mxu0 %v1849_v41  ;;  %1588 = vmatmul.mubr.msk.f32.vlgmr.msra.gmra.mrb[0].mxu1 %vm243_vm0, %v2190_v26  ;;  %v451_v59 = vld [vmem:[#allocation2 + $0x178] sm:$0xff]  ;;  %v1789_v60 = vpack.c.bf16 %v435_v53, %v429_v50  ;;  %v428_v61 = vld [vmem:[#allocation2 + $0xc0] sm:$0xff]  ;;  %v434_v62 = vld [vmem:[#allocation2 + $0xf0] sm:$0xff]  ;;  %v1855_v63 = vpack.c.bf16 %v438_v56, %v432_v55 }
  0x39   : > { %1784 = vmatpush1.bf16.msra.mxu1 %v1783_v45  ;;  %397 = vmatprep.mubr.f32.mxu1 %v2056_v0  ;;  %v441_v1 = vld [vmem:[#allocation2 + $0x128] sm:$0xff]  ;;  %v447_v2 = vld [vmem:[#allocation2 + $0x158] sm:$0xff]  ;;  %v1857_v3 = vpack.c.bf16 %v451_v59, %v445_v57  ;;  %v444_v4 = vld [vmem:[#allocation2 + $0x140] sm:$0xff]  ;;  %v1791_v8 = vpack.c.bf16 %v434_v62, %v428_v61 }
  0x3a   : > { %1587 = vmatmul.mubr.msk.f32.gmra.mrb[2].mxu0 %vm243_vm0, %v2196_v44  ;;  %1786 = vmatprep.subr.bf16.mxu1 %v1785_v48  ;;  %v450_v5 = vld [vmem:[#allocation2 + $0x170] sm:$0xff]  ;;  %v457_v6 = vld [vmem:[#allocation2 + $0x1a8] sm:$0xff]  ;;  %v463_v7 = vld [vmem:[#allocation2 + $0x1d8] sm:$0xff]  ;;  %v1793_v9 = vpack.c.bf16 %v447_v2, %v441_v1  ;;  %v219_v2 = vlaneseq }
  0x3b   : > { %1852 = vmatpush1.bf16.msra.mxu0 %v1851_v49  ;;  %734 = vmatprep.mubr.f32.mxu0 %v2056_v0  ;;  %v440_v10 = vld [vmem:[#allocation2 + $0x120] sm:$0xff]  ;;  %v446_v11 = vld [vmem:[#allocation2 + $0x150] sm:$0xff]  ;;  %v1859_v12 = vpack.c.bf16 %v450_v5, %v444_v4  ;;  %v453_v13 = vld [vmem:[#allocation2 + $0x188] sm:$0xff]  ;;  %v1861_v15 = vpack.c.bf16 %v463_v7, %v457_v6 }
  0x3c   : > { %1854 = vmatprep.subr.bf16.mxu0 %v1853_v54  ;;  %1589 = vmatmul.mubr.msk.f32.gmra.mrb[2].mxu1 %vm243_vm0, %v2196_v44  ;;  %v459_v14 = vld [vmem:[#allocation2 + $0x1b8] sm:$0xff]  ;;  %v456_v16 = vld [vmem:[#allocation2 + $0x1a0] sm:$0xff]  ;;  %v462_v17 = vld [vmem:[#allocation2 + $0x1d0] sm:$0xff]  ;;  %v1795_v20 = vpack.c.bf16 %v446_v11, %v440_v10 }
  0x3d   : > { %1788 = vmatpush1.bf16.msra.mxu1 %v1787_v58  ;;  %564 = vmatprep.mubr.f32.mxu1 %v2056_v0  ;;  %v469_v18 = vld [vmem:[#allocation2 + $0x208] sm:$0xff]  ;;  %v475_v19 = vld [vmem:[#allocation2 + $0x238] sm:$0xff]  ;;  %v1797_v21 = vpack.c.bf16 %v459_v14, %v453_v13  ;;  %v452_v22 = vld [vmem:[#allocation2 + $0x180] sm:$0xff]  ;;  %v1863_v24 = vpack.c.bf16 %v462_v17, %v456_v16 }
  0x3e   : > { %1790 = vmatprep.subr.bf16.mxu1 %v1789_v60  ;;  %v458_v23 = vld [vmem:[#allocation2 + $0x1b0] sm:$0xff]  ;;  %v465_v25 = vld [vmem:[#allocation2 + $0x1e8] sm:$0xff]  ;;  %v471_v27 = vld [vmem:[#allocation2 + $0x218] sm:$0xff]  ;;  %v1865_v28 = vpack.c.bf16 %v475_v19, %v469_v18 }
  0x3f   : > { %1856 = vmatpush1.bf16.msra.mxu0 %v1855_v63  ;;  %v468_v29 = vld [vmem:[#allocation2 + $0x200] sm:$0xff]  ;;  %v474_v30 = vld [vmem:[#allocation2 + $0x230] sm:$0xff]  ;;  %v481_v31 = vld [vmem:[#allocation2 + $0x268] sm:$0xff]  ;;  %v1799_v33 = vpack.c.bf16 %v458_v23, %v452_v22  ;;  %v1801_v34 = vpack.c.bf16 %v471_v27, %v465_v25 }
  0x40   : > { %1858 = vmatprep.subr.bf16.mxu0 %v1857_v3  ;;  %v487_v32 = vld [vmem:[#allocation2 + $0x298] sm:$0xff]  ;;  %v464_v35 = vld [vmem:[#allocation2 + $0x1e0] sm:$0xff]  ;;  %v470_v36 = vld [vmem:[#allocation2 + $0x210] sm:$0xff]  ;;  %v1867_v37 = vpack.c.bf16 %v474_v30, %v468_v29  ;;  %v2208_v3 = vshrl.u32 %v219_v2, 7 }
  0x41   : > { %1792 = vmatpush1.bf16.msra.mxu1 %v1791_v8  ;;  %v477_v38 = vld [vmem:[#allocation2 + $0x248] sm:$0xff]  ;;  %v483_v39 = vld [vmem:[#allocation2 + $0x278] sm:$0xff]  ;;  %v1869_v40 = vpack.c.bf16 %v487_v32, %v481_v31  ;;  %v480_v41 = vld [vmem:[#allocation2 + $0x260] sm:$0xff]  ;;  %v1803_v46 = vpack.c.bf16 %v470_v36, %v464_v35 }
  0x42   : > { %1794 = vmatprep.subr.bf16.mxu1 %v1793_v9  ;;  %v486_v42 = vld [vmem:[#allocation2 + $0x290] sm:$0xff]  ;;  %v493_v43 = vld [vmem:[#allocation2 + $0x2c8] sm:$0xff]  ;;  %v499_v45 = vld [vmem:[#allocation2 + $0x2f8] sm:$0xff]  ;;  %v1805_v47 = vpack.c.bf16 %v483_v39, %v477_v38  ;;  %v2211_v9 = vadd.s32 8, %v2208_v3 }
  0x43   : > { %1860 = vmatpush1.bf16.msra.mxu0 %v1859_v12  ;;  %v476_v48 = vld [vmem:[#allocation2 + $0x240] sm:$0xff]  ;;  %v482_v49 = vld [vmem:[#allocation2 + $0x270] sm:$0xff]  ;;  %v1871_v50 = vpack.c.bf16 %v486_v42, %v480_v41  ;;  %v489_v51 = vld [vmem:[#allocation2 + $0x2a8] sm:$0xff]  ;;  %v1873_v53 = vpack.c.bf16 %v499_v45, %v493_v43 }
  0x44   : > { %1862 = vmatprep.subr.bf16.mxu0 %v1861_v15  ;;  %v495_v52 = vld [vmem:[#allocation2 + $0x2d8] sm:$0xff]  ;;  %v492_v54 = vld [vmem:[#allocation2 + $0x2c0] sm:$0xff]  ;;  %v498_v55 = vld [vmem:[#allocation2 + $0x2f0] sm:$0xff]  ;;  %v1807_v56 = vpack.c.bf16 %v482_v49, %v476_v48  ;;  %vm223_vm1 = vcmp.lt.s32.totalorder %v2211_v9, 12 }
  0x45   : > { %1796 = vmatpush1.bf16.msra.mxu1 %v1795_v20  ;;  %v1809_v57 = vpack.c.bf16 %v495_v52, %v489_v51  ;;  %v488_v58 = vld [vmem:[#allocation2 + $0x2a0] sm:$0xff]  ;;  %v494_v59 = vld [vmem:[#allocation2 + $0x2d0] sm:$0xff]  ;;  %v1875_v60 = vpack.c.bf16 %v498_v55, %v492_v54  ;;  %v407_v62 = vld [vmem:[#allocation2 + $0x18] sm:$0xff] }
  0x46   : > { %1798 = vmatprep.subr.bf16.mxu1 %v1797_v21  ;;  %v1811_v61 = vpack.c.bf16 %v494_v59, %v488_v58  ;;  %v413_v63 = vld [vmem:[#allocation2 + $0x48] sm:$0xff]  ;;  %v406_v4 = vld [vmem:[#allocation2 + $0x10] sm:$0xff]  ;;  %v412_v5 = vld [vmem:[#allocation2 + $0x40] sm:$0xff] }
  0x47   : > { %1864 = vmatpush1.bf16.msra.mxu0 %v1863_v24  ;;  %v1813_v1 = vpack.c.bf16 %v413_v63, %v407_v62  ;;  %v419_v6 = vld [vmem:[#allocation2 + $0x78] sm:$0xff]  ;;  %v425_v7 = vld [vmem:[#allocation2 + $0xa8] sm:$0xff]  ;;  %v1815_v8 = vpack.c.bf16 %v412_v5, %v406_v4  ;;  %v418_v11 = vld [vmem:[#allocation2 + $0x70] sm:$0xff] }
  0x48   : > { %1866 = vmatprep.subr.bf16.mxu0 %v1865_v28  ;;  %v1817_v10 = vpack.c.bf16 %v425_v7, %v419_v6  ;;  %v424_v12 = vld [vmem:[#allocation2 + $0xa0] sm:$0xff]  ;;  %v431_v14 = vld [vmem:[#allocation2 + $0xd8] sm:$0xff]  ;;  %v437_v15 = vld [vmem:[#allocation2 + $0x108] sm:$0xff] }
  0x49   : > { %1800 = vmatpush1.bf16.msra.mxu1 %v1799_v33  ;;  %v1819_v17 = vpack.c.bf16 %v424_v12, %v418_v11  ;;  %v1821_v18 = vpack.c.bf16 %v437_v15, %v431_v14  ;;  %v430_v19 = vld [vmem:[#allocation2 + $0xd0] sm:$0xff]  ;;  %v436_v20 = vld [vmem:[#allocation2 + $0x100] sm:$0xff]  ;;  %v443_v22 = vld [vmem:[#allocation2 + $0x138] sm:$0xff] }
  0x4a   : > { %1802 = vmatprep.subr.bf16.mxu1 %v1801_v34  ;;  %v449_v23 = vld [vmem:[#allocation2 + $0x168] sm:$0xff]  ;;  %v1823_v31 = vpack.c.bf16 %v436_v20, %v430_v19  ;;  %v442_v34 = vld [vmem:[#allocation2 + $0x130] sm:$0xff]  ;;  %v448_v35 = vld [vmem:[#allocation2 + $0x160] sm:$0xff] }
  0x4b   : > { %1868 = vmatpush1.bf16.msra.mxu0 %v1867_v37  ;;  %v1825_v33 = vpack.c.bf16 %v449_v23, %v443_v22  ;;  %v455_v36 = vld [vmem:[#allocation2 + $0x198] sm:$0xff]  ;;  %v461_v37 = vld [vmem:[#allocation2 + $0x1c8] sm:$0xff]  ;;  %v454_v42 = vld [vmem:[#allocation2 + $0x190] sm:$0xff] }
  0x4c   : > { %1870 = vmatprep.subr.bf16.mxu0 %v1869_v40  ;;  %v1827_v40 = vpack.c.bf16 %v448_v35, %v442_v34  ;;  %v1829_v41 = vpack.c.bf16 %v461_v37, %v455_v36  ;;  %v460_v43 = vld [vmem:[#allocation2 + $0x1c0] sm:$0xff]  ;;  %v467_v45 = vld [vmem:[#allocation2 + $0x1f8] sm:$0xff]  ;;  %v466_v49 = vld [vmem:[#allocation2 + $0x1f0] sm:$0xff] }
  0x4d   : > { %1804 = vmatpush1.bf16.msra.mxu1 %v1803_v46  ;;  %v473_v46 = vld [vmem:[#allocation2 + $0x228] sm:$0xff]  ;;  %v479_v51 = vld [vmem:[#allocation2 + $0x258] sm:$0xff]  ;;  %v478_v55 = vld [vmem:[#allocation2 + $0x250] sm:$0xff] }
  0x4e   : > { %1806 = vmatprep.subr.bf16.mxu1 %v1805_v47  ;;  %v1831_v47 = vpack.c.bf16 %v460_v43, %v454_v42  ;;  %v1833_v48 = vpack.c.bf16 %v473_v46, %v467_v45  ;;  %v485_v52 = vld [vmem:[#allocation2 + $0x288] sm:$0xff]  ;;  %v496_v62 = vld [vmem:[#allocation2 + $0x2e0] sm:$0xff] }
  0x4f   : > { %1872 = vmatpush1.bf16.msra.mxu0 %v1871_v50  ;;  %v472_v50 = vld [vmem:[#allocation2 + $0x220] sm:$0xff]  ;;  %v1837_v54 = vpack.c.bf16 %v485_v52, %v479_v51  ;;  %v497_v58 = vld [vmem:[#allocation2 + $0x2e8] sm:$0xff] }
  0x50   : > { %1874 = vmatprep.subr.bf16.mxu0 %v1873_v53  ;;  %v1835_v53 = vpack.c.bf16 %v472_v50, %v466_v49 }
  0x51   : > { %1808 = vmatpush1.bf16.msra.mxu1 %v1807_v56  ;;  %v484_v56 = vld [vmem:[#allocation2 + $0x280] sm:$0xff] }
  0x52   : > { %1810 = vmatprep.subr.bf16.mxu1 %v1809_v57  ;;  %v491_v57 = vld [vmem:[#allocation2 + $0x2b8] sm:$0xff]  ;;  %v1839_v59 = vpack.c.bf16 %v484_v56, %v478_v55 }
  0x53   : > { %1876 = vmatpush1.bf16.msra.mxu0 %v1875_v60  ;;  %v1841_v60 = vpack.c.bf16 %v497_v58, %v491_v57 }
  0x55   : > { %1812 = vmatpush1.bf16.msra.mxu1 %v1811_v61  ;;  %v490_v61 = vld [vmem:[#allocation2 + $0x2b0] sm:$0xff] }
  0x56   : > { %1814 = vmatprep.subr.bf16.mxu1 %v1813_v1  ;;  %v1843_v63 = vpack.c.bf16 %v496_v62, %v490_v61 }
 0x109   : > { %v2213_v13 = vpop.f32.mrb[0].mxu0 }
 0x10a   : > { %v2215_v16 = vpop.f32.mrb[1].mxu0  ;;  %565 = vmatmul.mubr.f32.vlgmr.msra.gmra.mrb[4].mxu1 %v2213_v13  ;;  %735 = vmatmul.mubr.f32.vlgmr.msra.gmra.mrb[4].mxu0 %v2213_v13 }
 0x10b   : > { %1816 = vmatpush1.bf16.msra.mxu1 %v1815_v8  ;;  %570 = vmatprep.mubr.f32.mxu1 %v2056_v0  ;;  %v2224_v24 = vpop.f32.mrb[0].mxu1 }
 0x10c   : > { %1818 = vmatprep.subr.bf16.mxu1 %v1817_v10  ;;  %738 = vmatprep.mubr.f32.mxu0 %v2056_v0  ;;  %v2233_v28 = vpop.f32.mrb[1].mxu1 }
 0x10d   : > { %v2222_v21 = vpop.f32.mrb[2].mxu0 }
 0x10e   : > { %v1368_v25 = vsel %vm223_vm1, %v2222_v21, -1e+30  ;;  %v2229_v27 = vpop.f32.mrb[3].mxu0  ;;  %571 = vmatmul.mubr.f32.gmra.mrb[6].mxu1 %v2222_v21  ;;  %739 = vmatmul.mubr.f32.gmra.mrb[6].mxu0 %v2222_v21 }
 0x10f   : > { %v2236_v29 = vmax.f32 %v2213_v13, %v1368_v25  ;;  %v1377_v30 = vsel %vm223_vm1, %v2229_v27, -1e+30  ;;  %1820 = vmatpush1.bf16.msra.mxu1 %v1819_v17  ;;  %576 = vmatprep.mubr.f32.mxu1 %v2056_v0  ;;  %v2246_v38 = vpop.f32.mrb[2].mxu1 }
 0x110   : > { %v2243_v32 = vmax.f32 %v2215_v16, %v1377_v30  ;;  %1822 = vmatprep.subr.bf16.mxu1 %v1821_v18  ;;  %742 = vmatprep.mubr.f32.mxu0 %v2056_v0  ;;  %v2250_v39 = vpop.f32.mrb[3].mxu1 }
 0x112   : > { %577 = vmatmul.mubr.f32.gmra.mrb[8].mxu1 %v2215_v16  ;;  %743 = vmatmul.mubr.f32.gmra.mrb[8].mxu0 %v2215_v16 }
 0x113   : > { %1824 = vmatpush1.bf16.msra.mxu1 %v1823_v31  ;;  %580 = vmatprep.mubr.f32.mxu1 %v2056_v0 }
 0x114   : > { %1826 = vmatprep.subr.bf16.mxu1 %v1825_v33  ;;  %748 = vmatprep.mubr.f32.mxu0 %v2056_v0 }
 0x116   : > { %581 = vmatmul.mubr.f32.gmra.mrb[10].mxu1 %v2229_v27  ;;  %749 = vmatmul.mubr.f32.gmra.mrb[10].mxu0 %v2229_v27 }
 0x117   : > { %1828 = vmatpush1.bf16.msra.mxu1 %v1827_v40  ;;  %649 = vmatprep.mubr.f32.mxu1 %v2056_v0  ;;  %v225_v40 = vand.u32 127, %v219_v2 }
 0x118   : > { %1830 = vmatprep.subr.bf16.mxu1 %v1829_v41 }
 0x119   : > { %vm226_vm2 = vcmp.lt.s32.totalorder %v225_v40, 12  ;;  %v783_v40 = vld [vmem:[%s2446_s3 + $0xc0] sm:$0xff] }
 0x11b   : > { %1832 = vmatpush1.bf16.msra.mxu1 %v1831_v47 }
 0x11c   : > { %1834 = vmatprep.subr.bf16.mxu1 %v1833_v48 }
 0x11f   : > { %1836 = vmatpush1.bf16.msra.mxu1 %v1835_v53 }
 0x120   : > { %1838 = vmatprep.subr.bf16.mxu1 %v1837_v54 }
 0x123   : > { %1840 = vmatpush1.bf16.msra.mxu1 %v1839_v59 }
 0x124   : > { %1842 = vmatprep.subr.bf16.mxu1 %v1841_v60 }
 0x127   : > { %1844 = vmatpush1.bf16.msra.mxu1 %v1843_v63 }
 0x12a   : > { %650 = vmatmul.mubr.f32.vlgmr.msra.gmra.mrb[12].mxu1 %v2213_v13 }
 0x12b   : > { %654 = vmatprep.mubr.f32.mxu1 %v2056_v0 }
 0x12e   : > { %655 = vmatmul.mubr.f32.gmra.mrb[14].mxu1 %v2222_v21 }
 0x12f   : > { %659 = vmatprep.mubr.f32.mxu1 %v2056_v0 }
 0x132   : > { %660 = vmatmul.mubr.f32.gmra.mrb[16].mxu1 %v2215_v16 }
 0x133   : > { %664 = vmatprep.mubr.f32.mxu1 %v2056_v0 }
 0x136   : > { %665 = vmatmul.mubr.f32.gmra.mrb[18].mxu1 %v2229_v27 }
 0x137   : > { %1660 = vmatprep.mubr.f32.mxu1 %v2224_v24 }
 0x1dd   : > { %v566_v1 = vpop.f32.mrb[4].mxu1  ;;  %v736_v4 = vpop.f32.mrb[4].mxu0 }
 0x1de   : > { %v568_v5 = vpop.f32.mrb[5].mxu1  ;;  %v737_v6 = vpop.f32.mrb[5].mxu0 }
 0x1e1   : > { %v572_v7 = vpop.f32.mrb[6].mxu1  ;;  %v740_v8 = vpop.f32.mrb[6].mxu0 }
 0x1e2   : > { %v1877_v10 = vpack.c.bf16 %v572_v7, %v566_v1  ;;  %v574_v11 = vpop.f32.mrb[7].mxu1  ;;  %v741_v12 = vpop.f32.mrb[7].mxu0 }
 0x1e3   : > { %v2265_v13 = vpack.c.bf16 %v574_v11, %v568_v5 }
 0x1e4   : > { %1878 = vmatprep.subr.bf16.mxu1 %v1877_v10 }
 0x1e5   : > { %v578_v14 = vpop.f32.mrb[8].mxu1  ;;  %v744_v15 = vpop.f32.mrb[8].mxu0  ;;  %1880 = vmatpush3.bf16.xpose.msra.mxu1 %v1877_v10 }
 0x1e6   : > { %v579_v16 = vpop.f32.mrb[9].mxu1  ;;  %v746_v17 = vpop.f32.mrb[9].mxu0 }
 0x1e9   : > { %v582_v18 = vpop.f32.mrb[10].mxu1  ;;  %v750_v19 = vpop.f32.mrb[10].mxu0 }
 0x1ea   : > { %v1889_v20 = vpack.c.bf16 %v750_v19, %v744_v15  ;;  %v583_v21 = vpop.f32.mrb[11].mxu1  ;;  %v752_v22 = vpop.f32.mrb[11].mxu0 }
 0x1ec   : > { %1661 = vmatmul.mubr.f32.vlgmr.msra.gmra.mrb[20].mxu1 %v2246_v38 }
 0x1fd   : > { %v651_v23 = vpop.f32.mrb[12].mxu1 }
 0x1fe   : > { %v2268_v24 = vadd.f32 %v746_v17, %v651_v23  ;;  %v653_v25 = vpop.f32.mrb[13].mxu1  ;;  %v777_v23 = vld [vmem:[%s2446_s3 + $0x90] sm:$0xff] }
 0x1ff   : > { %v778_v25 = vld [vmem:[%s2446_s3 + $0x98] sm:$0xff] }
 0x201   : > { %v656_v27 = vpop.f32.mrb[14].mxu1 }
 0x202   : > { %v2270_v30 = vadd.f32 %v752_v22, %v656_v27  ;;  %v658_v31 = vpop.f32.mrb[15].mxu1  ;;  %v776_v22 = vld [vmem:[%s2446_s3 + $0x88] sm:$0xff] }
 0x203   : > { %v1893_v27 = vpack.c.bf16 %v777_v23, %v776_v22  ;;  %v779_v31 = vld [vmem:[%s2446_s3 + $0xa0] sm:$0xff] }
 0x204   : > { %v775_v22 = vld [vmem:[%s2446_s3 + $0x80] sm:$0xff] }
 0x205   : > { %v661_v33 = vpop.f32.mrb[16].mxu1  ;;  %1894 = vmatprep.subr.bf16.mxu0 %v1893_v27 }
 0x206   : > { %v662_v34 = vpop.f32.mrb[17].mxu1  ;;  %v1897_v33 = vpack.c.bf16 %v779_v31, %v778_v25  ;;  %1896 = vmatpush3.bf16.msra.mxu0 %v1893_v27 }
 0x208   : > { %1898 = vmatprep.subr.bf16.mxu0 %v1897_v33 }
 0x209   : > { %v666_v35 = vpop.f32.mrb[18].mxu1 }
 0x20a   : > { %v667_v36 = vpop.f32.mrb[19].mxu1  ;;  %v781_v35 = vld [vmem:[%s2446_s3 + $0xb0] sm:$0xff]  ;;  %1900 = vmatpush3.bf16.msra.mxu0 %v1897_v33 }
 0x20b   : > { %v1881_v37 = vpack.c.bf16 %v667_v36, %v662_v34  ;;  %v780_v34 = vld [vmem:[%s2446_s3 + $0xa8] sm:$0xff] }
 0x20c   : > { %v1901_v36 = vpack.c.bf16 %v781_v35, %v780_v34 }
 0x20d   : > { %1882 = vmatprep.subr.bf16.mxu1 %v1881_v37 }
 0x20e   : > { %1884 = vmatpush3.bf16.msra.mxu1 %v1881_v37  ;;  %v782_v37 = vld [vmem:[%s2446_s3 + $0xb8] sm:$0xff]  ;;  %1902 = vmatprep.subr.bf16.mxu0 %v1901_v36 }
 0x20f   : > { %1886 = vmatprep.subr.bf16.mxu1 %v2265_v13  ;;  %1904 = vmatpush3.bf16.msra.mxu0 %v1901_v36 }
 0x2bf   : > { %v1662_v38 = vpop.f32.mrb[20].mxu1 }
 0x2c0   : > { %v862_v41 = vpop.f32.mrb[21].mxu1  ;;  %v872_v42 = vmul.f32 0.25, %v1662_v38  ;;  %v1905_v38 = vpack.c.bf16 %v783_v40, %v782_v37 }
 0x2c1   : > { %v871_v43 = vmul.f32 0.25, %v862_v41  ;;  %v784_v41 = vld [vmem:[%s2446_s3 + $0xc8] sm:$0xff] }
 0x2c2   : > { %v874_v47 = vsel %vm226_vm2, %v872_v42, -1e+30  ;;  %v785_v42 = vld [vmem:[%s2446_s3 + $0xd0] sm:$0xff]  ;;  %1906 = vmatprep.subr.bf16.mxu0 %v1905_v38 }
 0x2c3   : > { %v873_v45 = vsel %vm226_vm2, %v871_v43, -1e+30  ;;  %v879_v48 = vsel %vm875_vm3, %v874_v47, -inf  ;;  %v1909_v43 = vpack.c.bf16 %v785_v42, %v784_v41  ;;  %1908 = vmatpush3.bf16.msra.mxu0 %v1905_v38 }
 0x2c4   : > { %v876_v46 = vsel %vm875_vm3, %v873_v45, -inf }
 0x2c5   : > { %877 = vmax.xlane.f32.xlu0 %v876_v46  ;;  %v787_v46 = vld [vmem:[%s2446_s3 + $0xe0] sm:$0xff]  ;;  %1910 = vmatprep.subr.bf16.mxu0 %v1909_v43 }
 0x2c7   : > { %1912 = vmatpush3.bf16.msra.mxu0 %v1909_v43 }
 0x2c9   : > { %880 = vmax.xlane.f32.xlu0 %v879_v48  ;;  %v788_v48 = vld [vmem:[%s2446_s3 + $0xe8] sm:$0xff] }
 0x352   : > { %v878_v49 = vpop.xlane.xlu0 %877 }
 0x353   : > { %v882_v50 = vsub.f32 %v873_v45, %v878_v49  ;;  %v786_v45 = vld [vmem:[%s2446_s3 + $0xd8] sm:$0xff]  ;;  %v789_v49 = vld [vmem:[%s2446_s3 + $0xf0] sm:$0xff] }
 0x355   : > { %v884_v51 = vmul.f32 1.442695, %v882_v50  ;;  %v1917_v50 = vpack.c.bf16 %v789_v49, %v788_v48  ;;  %v2057_v48 = vmov 0.0|0.0  }
 0x356   : > { %v881_v2 = vpop.xlane.xlu0 %880 }
 0x357   : > { %1993 = vpow2.f32 %v884_v51  ;;  %v883_v52 = vsub.f32 %v874_v47, %v881_v2  ;;  %v1913_v47 = vpack.c.bf16 %v787_v46, %v786_v45  ;;  %v790_v51 = vld [vmem:[%s2446_s3 + $0xf8] sm:$0xff]  ;;  %v791_v2 = vld [vmem:[%s2446_s3 + $0x100] sm:$0xff]  ;;  %v793_v46 = vld [vmem:[%s2446_s3 + $0x110] sm:$0xff] }
 0x359   : > { %v886_v53 = vmul.f32 1.442695, %v883_v52  ;;  %1914 = vmatprep.subr.bf16.mxu0 %v1913_v47  ;;  %v1921_v52 = vpack.c.bf16 %v791_v2, %v790_v51 }
 0x35a   : > { %1916 = vmatpush3.bf16.msra.mxu0 %v1913_v47  ;;  %v794_v47 = vld [vmem:[%s2446_s3 + $0x118] sm:$0xff] }
 0x35b   : > { %1995 = vpow2.f32 %v886_v53  ;;  %1918 = vmatprep.subr.bf16.mxu0 %v1917_v50 }
 0x35e   : > { %1920 = vmatpush3.bf16.msra.mxu0 %v1917_v50  ;;  %v795_v50 = vld [vmem:[%s2446_s3 + $0x120] sm:$0xff] }
 0x35f   : > { %1922 = vmatprep.subr.bf16.mxu0 %v1921_v52  ;;  %v1961_v51 = vpack.c.bf16 %v795_v50, %v794_v47 }
 0x361   : > { %v1994_v54 = vpop.eup %1993 }
 0x362   : > { %v888_v55 = vsel %vm875_vm3, %v1994_v54, 0.0  ;;  %1924 = vmatpush3.bf16.msra.mxu0 %v1921_v52 }
 0x363   : > { %889 = vadd.xlane.f32.xlu1 %v888_v55 }
 0x365   : > { %v1996_v56 = vpop.eup %1995 }
 0x366   : > { %v891_v57 = vsel %vm875_vm3, %v1996_v56, 0.0 }
 0x367   : > { %892 = vadd.xlane.f32.xlu1 %v891_v57 }
 0x3f0   : > { %v890_v58 = vpop.xlane.xlu1 %889 }
 0x3f1   : > { %1997 = vrcp.f32 %v890_v58 }
 0x3f4   : > { %v893_v59 = vpop.xlane.xlu1 %892 }
 0x3f5   : > { %1999 = vrcp.f32 %v893_v59  ;;  %v760_v59 = vld [vmem:[%s2446_s3 + $0x8] sm:$0xff] }
 0x3fb   : > { %v1998_v60 = vpop.eup %1997 }
 0x3fc   : > { %v895_v61 = vmul.f32 %v1998_v60, %v1994_v54  ;;  %v761_v60 = vld [vmem:[%s2446_s3 + $0x10] sm:$0xff] }
 0x3fe   : > { %1667 = vmatprep.mubr.msk.f32.mxu1 %vm875_vm3, %v895_v61  ;;  %v1925_v61 = vpack.c.bf16 %v761_v60, %v760_v59 }
 0x3ff   : > { %v2000_v62 = vpop.eup %1999 }
 0x400   : > { %v897_v63 = vmul.f32 %v2000_v62, %v1996_v56  ;;  %1926 = vmatprep.subr.bf16.mxu0 %v1925_v61  ;;  %v762_v62 = vld [vmem:[%s2446_s3 + $0x18] sm:$0xff] }
 0x402   : > { %1668 = vmatmul.mubr.msk.f32.vlgmr.msra.gmra.mrb[22].mxu1 %vm875_vm3, %v897_v63  ;;  %v763_v63 = vld [vmem:[%s2446_s3 + $0x20] sm:$0xff] }
 0x403   : > { %1888 = vmatpush3.bf16.xpose.msra.mxu1 %v2265_v13  ;;  %1674 = vmatprep.mubr.f32.mxu1 %v2233_v28 }
 0x404   : > { %1890 = vmatprep.subr.bf16.mxu1 %v1889_v20 }
 0x40a   : > { %1675 = vmatmul.mubr.f32.vlgmr.msra.gmra.mrb[24].mxu1 %v2250_v39 }
 0x40b   : > { %1892 = vmatpush3.bf16.msra.mxu1 %v1889_v20 }
 0x40c   : > { %1957 = vmatprep.subr.bf16.mxu1 %v2057_v48 }
 0x4d5   : > { %v2285_v1 = vpop.f32.mrb[22].mxu1 }
 0x4d6   : > { %v2287_v4 = vpop.f32.mrb[23].mxu1 }
 0x4dd   : > { %v1676_v5 = vpop.f32.mrb[24].mxu1 }
 0x4de   : > { %v1055_v6 = vmul.f32 0.25, %v1676_v5  ;;  %v1045_v7 = vpop.f32.mrb[25].mxu1 }
 0x4df   : > { %v1054_v8 = vmul.f32 0.25, %v1045_v7  ;;  %v1929_v7 = vpack.c.bf16 %v763_v63, %v762_v62  ;;  %v1379_v63 = vrot.slane %v2243_v32, 4 }
 0x4e0   : > { %v1057_v10 = vsel %vm226_vm2, %v1055_v6, -1e+30 }
 0x4e1   : > { %v1061_v11 = vsel %vm875_vm3, %v1057_v10, -inf  ;;  %v1056_v12 = vsel %vm226_vm2, %v1054_v8, -1e+30  ;;  %v764_v8 = vld [vmem:[%s2446_s3 + $0x28] sm:$0xff] }
 0x4e2   : > { %1062 = vmax.xlane.f32.xlu1 %v1061_v11  ;;  %v1058_v28 = vsel %vm875_vm3, %v1056_v12, -inf }
 0x4e3   : > { %1059 = vmax.xlane.f32.xlu0 %v1058_v28  ;;  %v767_v28 = vld [vmem:[%s2446_s3 + $0x40] sm:$0xff] }
 0x56f   : > { %v1063_v39 = vpop.xlane.xlu1 %1062 }
 0x570   : > { %v1065_v13 = vsub.f32 %v1057_v10, %v1063_v39  ;;  %v1060_v14 = vpop.xlane.xlu0 %1059  ;;  %v765_v10 = vld [vmem:[%s2446_s3 + $0x30] sm:$0xff] }
 0x571   : > { %v1064_v15 = vsub.f32 %v1056_v12, %v1060_v14  ;;  %v1933_v11 = vpack.c.bf16 %v765_v10, %v764_v8  ;;  %v766_v12 = vld [vmem:[%s2446_s3 + $0x38] sm:$0xff] }
 0x572   : > { %v1068_v16 = vmul.f32 1.442695, %v1065_v13  ;;  %v1937_v39 = vpack.c.bf16 %v767_v28, %v766_v12  ;;  %v768_v13 = vld [vmem:[%s2446_s3 + $0x48] sm:$0xff] }
 0x573   : > { %v1066_v17 = vmul.f32 1.442695, %v1064_v15  ;;  %v770_v15 = vld [vmem:[%s2446_s3 + $0x58] sm:$0xff] }
 0x574   : > { %2001 = vpow2.f32 %v1068_v16  ;;  %v771_v16 = vld [vmem:[%s2446_s3 + $0x60] sm:$0xff] }
 0x575   : > { %2003 = vpow2.f32 %v1066_v17  ;;  %v1945_v17 = vpack.c.bf16 %v771_v16, %v770_v15 }
 0x57e   : > { %v2002_v18 = vpop.eup %2001 }
 0x57f   : > { %v2004_v19 = vpop.eup %2003  ;;  %v1073_v20 = vsel %vm875_vm3, %v2002_v18, 0.0 }
 0x580   : > { %1074 = vadd.xlane.f32.xlu1 %v1073_v20  ;;  %v1070_v21 = vsel %vm875_vm3, %v2004_v19, 0.0 }
 0x581   : > { %1071 = vadd.xlane.f32.xlu0 %v1070_v21  ;;  %v774_v21 = vld [vmem:[%s2446_s3 + $0x78] sm:$0xff] }
 0x582   : > { %v1953_v23 = vpack.c.bf16 %v775_v22, %v774_v21 }
 0x60d   : > { %v1075_v53 = vpop.xlane.xlu1 %1074 }
 0x60e   : > { %2005 = vrcp.f32 %v1075_v53  ;;  %v1072_v54 = vpop.xlane.xlu0 %1071 }
 0x60f   : > { %2007 = vrcp.f32 %v1072_v54 }
 0x618   : > { %v2006_v55 = vpop.eup %2005 }
 0x619   : > { %v2008_v56 = vpop.eup %2007  ;;  %v1079_v58 = vmul.f32 %v2006_v55, %v2002_v18  ;;  %v772_v18 = vld [vmem:[%s2446_s3 + $0x68] sm:$0xff] }
 0x61a   : > { %v1077_v57 = vmul.f32 %v2008_v56, %v2004_v19  ;;  %v773_v19 = vld [vmem:[%s2446_s3 + $0x70] sm:$0xff] }
 0x61b   : > { %v1949_v20 = vpack.c.bf16 %v773_v19, %v772_v18 }
 0x61c   : > { %1681 = vmatprep.mubr.msk.f32.mxu1 %vm875_vm3, %v1077_v57 }
 0x61d   : > { %1682 = vmatmul.mubr.msk.f32.vlgmr.msra.gmra.mrb[26].mxu1 %vm875_vm3, %v1079_v58  ;;  %v1594_v58 = vld [vmem:[%s2446_s3] ss:$0 sm:$0xff] }
 0x61e   : > { %1762 = vmatprep.mubr.msk.f32.mxu1 %vm2058_vm4, %v2056_v0  ;;  %v1370_v0 = vrot.slane %v2236_v29, 4 }
 0x620   : > { %v1371_v8 = vmax.f32 %v2236_v29, %v1370_v0 }
 0x6f0   : > { %v1683_v5 = vpop.f32.mrb[26].mxu1 }
 0x6f1   : > { %v1152_v6 = vpop.f32.mrb[27].mxu1 }
 0x6f2   : > { %1716 = vmatprep.mubr.f32.mxu0 %v1152_v6 }
 0x6f3   : > { %1717 = vmatmul.mubr.f32.vlgmr.msra.gmra.mrb[12].mxu0 %v1683_v5 }
 0x6f4   : > { %1928 = vmatpush3.bf16.msra.mxu0 %v1925_v61  ;;  %1751 = vmatprep.mubr.f32.mxu0 %v2287_v4  ;;  %v769_v4 = vld [vmem:[%s2446_s3 + $0x50] sm:$0xff]  ;;  %v1595_v61 = vld [vmem:[%s2446_s3 + $0x1] ss:$0 sm:$0xff] }
 0x6f5   : > { %1930 = vmatprep.subr.bf16.mxu0 %v1929_v7  ;;  %v1941_v14 = vpack.c.bf16 %v769_v4, %v768_v13  ;;  %v1372_v4 = vrot.slane %v1371_v8, 2 }
 0x6f8   : > { %1932 = vmatpush3.bf16.msra.mxu0 %v1929_v7 }
 0x6f9   : > { %1934 = vmatprep.subr.bf16.mxu0 %v1933_v11 }
 0x6fc   : > { %1936 = vmatpush3.bf16.msra.mxu0 %v1933_v11  ;;  %v1380_v11 = vmax.f32 %v2243_v32, %v1379_v63 }
 0x6fd   : > { %1938 = vmatprep.subr.bf16.mxu0 %v1937_v39 }
 0x700   : > { %1940 = vmatpush3.bf16.msra.mxu0 %v1937_v39 }
 0x701   : > { %1942 = vmatprep.subr.bf16.mxu0 %v1941_v14 }
 0x704   : > { %1944 = vmatpush3.bf16.msra.mxu0 %v1941_v14  ;;  %v1381_v14 = vrot.slane %v1380_v11, 2 }
 0x705   : > { %1946 = vmatprep.subr.bf16.mxu0 %v1945_v17 }
 0x706   : > { %v1382_v18 = vmax.f32 %v1380_v11, %v1381_v14 }
 0x708   : > { %1948 = vmatpush3.bf16.msra.mxu0 %v1945_v17  ;;  %v1373_v17 = vmax.f32 %v1371_v8, %v1372_v4 }
 0x709   : > { %1950 = vmatprep.subr.bf16.mxu0 %v1949_v20 }
 0x70a   : > { %v1374_v21 = vrot.slane %v1373_v17, 1 }
 0x70c   : > { %1952 = vmatpush3.bf16.msra.mxu0 %v1949_v20  ;;  %v218_v20 = vld [vmem:[%s2166_s5 + $0x10] sm:$0x1] }
 0x70d   : > { %1954 = vmatprep.subr.bf16.mxu0 %v1953_v23  ;;  %v1386_v22 = vrot.slane %v218_v20, 7 }
 0x710   : > { %1956 = vmatpush3.bf16.msra.mxu0 %v1953_v23  ;;  %v1383_v23 = vrot.slane %v1382_v18, 1 }
 0x713   : > { %1752 = vmatmul.mubr.f32.vlgmr.msra.gmra.mrb[12].mxu0 %v2285_v1 }
 0x7e6   : > { %v1753_v25 = vpop.f32.mrb[12].mxu0 }
 0x7e7   : > { %v1312_v27 = vadd.f32 %v1753_v25, %v2196_v44  ;;  %v1302_v31 = vpop.f32.mrb[13].mxu0  ;;  %v1375_v25 = vmax.f32 %v1373_v17, %v1374_v21 }
 0x7e8   : > { %v1311_v33 = vadd.f32 %v1302_v31, %v2190_v26  ;;  %v792_v26 = vld [vmem:[%s2446_s3 + $0x108] sm:$0xff] }
 0x7e9   : > { %v1316_v34 = vsel %vm243_vm0, %v1312_v27, 0.0  ;;  %v1958_v49 = vpack.c.bf16 %v793_v46, %v792_v26 }
 0x7ea   : > { %1317 = vadd.xlane.f32.xlu0 %v1316_v34  ;;  %v1313_v35 = vsel %vm243_vm0, %v1311_v33, 0.0 }
 0x7eb   : > { %1314 = vadd.xlane.f32.xlu1 %v1313_v35  ;;  %1959 = vmatpush3.bf16.msra.mxu1 %v1958_v49  ;;  %v1502_v49 = vsub.s32 0, %v2208_v3 }
 0x7ec   : > { %1960 = vmatprep.subr.bf16.mxu1 %v2057_v48 }
 0x7ef   : > { %1962 = vmatpush3.bf16.msra.mxu1 %v1961_v51 }
 0x877   : > { %v1318_v36 = vpop.xlane.xlu0 %1317 }
 0x878   : > { %v1321_v37 = vmul.f32 0.03125, %v1318_v36  ;;  %v1315_v40 = vpop.xlane.xlu1 %1314 }
 0x879   : > { %v1320_v38 = vmul.f32 0.03125, %v1315_v40 }
 0x87a   : > { %v1323_v41 = vsub.f32 %v1312_v27, %v1321_v37  ;;  %v1384_v27 = vmax.f32 %v1382_v18, %v1383_v23 }
 0x87b   : > { %v1322_v42 = vsub.f32 %v1311_v33, %v1320_v38  ;;  %v759_v38 = vld [vmem:[%s2446_s3 + $0x2] sm:$0x1] }
 0x87c   : > { %v1325_v43 = vmul.f32 %v1323_v41, %v1323_v41 }
 0x87d   : > { %v1324_v1 = vmul.f32 %v1322_v42, %v1322_v42 }
 0x87e   : > { %v1329_v45 = vsel %vm243_vm0, %v1325_v43, 0.0  ;;  %v1480_v43 = vrot.slane %v759_v38, 7 }
 0x87f   : > { %1330 = vadd.xlane.f32.xlu0 %v1329_v45  ;;  %v1326_v44 = vsel %vm243_vm0, %v1324_v1, 0.0 }
 0x880   : > { %1327 = vadd.xlane.f32.xlu1 %v1326_v44 }
 0x90c   : > { %v1331_v2 = vpop.xlane.xlu0 %1330 }
 0x90d   : > { %v1333_v52 = vmul.f32 0.03125, %v1331_v2  ;;  %v1328_v53 = vpop.xlane.xlu1 %1327 }
 0x90e   : > { %v1332_v54 = vmul.f32 0.03125, %v1328_v53 }
 0x90f   : > { %v1335_v55 = vadd.f32 1e-05, %v1333_v52 }
 0x910   : > { %v1334_v56 = vadd.f32 1e-05, %v1332_v54 }
 0x911   : > { %2009 = vrsqrt.f32 %v1335_v55 }
 0x912   : > { %2011 = vrsqrt.f32 %v1334_v56 }
 0x91b   : > { %v2010_v57 = vpop.eup %2009 }
 0x91c   : > { %v2012_v59 = vpop.eup %2011  ;;  %v1339_v60 = vmul.f32 %v2010_v57, %v1323_v41 }
 0x91d   : > { %v1338_v62 = vmul.f32 %v2012_v59, %v1322_v42 }
 0x91e   : > { %v1345_v5 = vmul.f32 %v1594_v58, %v1339_v60 }
 0x91f   : > { %v1344_v6 = vmul.f32 %v1594_v58, %v1338_v62 }
 0x920   : > { %v1351_v7 = vadd.f32 %v1595_v61, %v1345_v5 }
 0x921   : > { %v1350_v10 = vadd.f32 %v1595_v61, %v1344_v6 }
 0x922   : > { %v1357_v12 = vsel %vm223_vm1, %v1351_v7, -1e+30 }
 0x923   : > { %v1359_v28 = vsel %vm243_vm0, %v1357_v12, -inf  ;;  %v1358_v39 = vsel %vm243_vm0, %v1350_v10, -inf }
 0x924   : > { %v1360_v13 = vmax.f32 %v1358_v39, %v1359_v28 }
 0x926   : > { %v1361_v15 = vrot.slane %v1360_v13, 4 }
 0x928   : > { %v1362_v16 = vmax.f32 %v1360_v13, %v1361_v15 }
 0x92a   : > { %v1363_v19 = vrot.slane %v1362_v16, 2 }
 0x92c   : > { %v1364_v29 = vmax.f32 %v1362_v16, %v1363_v19 }
 0x92e   : > { %v1365_v32 = vrot.slane %v1364_v29, 1 }
 0x930   : > { %v1366_v9 = vmax.f32 %v1364_v29, %v1365_v32 }
 0x932   : > { %v1389_v31 = vsel %vm1388_vm5, %v1366_v9, %v1386_v22 }
 0x933   : > { %v1391_v33 = vsel %vm1390_vm6, %v1389_v31, %v1375_v25 }
 0x934   : > { %v1393_v34 = vsel %vm1392_vm7, %v1391_v33, %v1384_v27 }
 0x935   : > { %1763 = vmatmul.mubr.msk.f32.vlgmr.msra.gmra.mrb[28].mxu1 %vm243_vm0, %v1393_v34 }
 0xa08   : > { %v1463_v35 = vpop.f32.mrb[28].mxu1 }
 0xa09   : > { %v1764_v36 = vpop.f32.mrb[29].mxu1  ;;  %v1474_v37 = vrot.slane %v1463_v35, 2  ;;  %v1469_v40 = vrot.slane %v1463_v35, 1  ;;  %v1467_v41 = vadd.f32 %v1463_v35, %v759_v38 }
 0xa0b   : > { %1475 = vrot.lane.b32.xlu1 %v1474_v37, %s2059_s30  ;;  %1470 = vrot.lane.b32.xlu0 %v1469_v40, %s2060_s6 }
 0xa0f   : > { %1484 = vrot.lane.b32.xlu1 %v1467_v41, %s2061_s7 }
 0xa7d   : > { %v1471_v42 = vpop.permute.xlu0 %1470  ;;  %v1476_v45 = vpop.permute.xlu1 %1475 }
 0xa7e   : > { %v1473_v1 = vadd.f32 %v1471_v42, %v1463_v35 }
 0xa80   : > { %v1478_v44 = vadd.f32 %v1476_v45, %v1473_v1 }
 0xa81   : > { %v1485_v47 = vpop.permute.xlu1 %1484 }
 0xa82   : > { %v1482_v26 = vadd.f32 %v1480_v43, %v1478_v44  ;;  %v1493_v48 = vsel %vm1492_vm8, 0.0, %v1485_v47 }
 0xa83   : > { %v1495_v50 = vsel %vm1494_vm9, %v1493_v48, 0.0 }
 0xa84   : > { %v1488_v46 = vrot.slane %v1482_v26, 1 }
 0xa86   : > { %1489 = vrot.lane.b32.xlu1 %v1488_v46, %s2062_s8 }
 0xaf8   : > { %v1490_v51 = vpop.permute.xlu1 %1489 }
 0xaf9   : > { %v1497_v2 = vsel %vm1496_vm10, %v1495_v50, %v1490_v51 }
 0xafa   : > { %v1499_v52 = vsel %vm1498_vm11, %v1497_v2, 0.0 }
 0xafb   : > { %v1503_v53 = vrot.slane %v1499_v52, %v1502_v49 }
 0xafd   : > { %v1504_v54 = vadd.f32 %v1503_v53, %v2268_v24  ;;  %v1505_v55 = vadd.f32 %v1503_v53, %v2270_v30 }
 0xaff   : > { %1506 = vst [vmem:[%s214_s16] sm:$0xff] %v1504_v54  ;;  %1507 = vst [vmem:[%s214_s16 + $0x8] sm:$0xff] %v1505_v55 }
 0xb00 PF: > { %s15_s15 = sadd.s32 1, %s2051_s15  }
 0xb01   : > { %p12_p5 = scmp.ge.s32.totalorder %s15_s15, 4  }
 0xb03   :  { %14 = sbr.rel (!%p12_p5) target bundleno = 1 (0x1), region = 71 }
 0xb0a   :  { %1530 = vsyncpa [#allocation3], 1 }
 0xb0b   :  { %1532 = vsyncpa [#allocation3 + $0x1], 1 }

</bundles_post_ra>
